<compile_context>
chip_gen: v6e
topology: v6e:2x2x1
jax: 0.10.0
libtpu: 0.0.40
codegen_flags: <defaults>
</compile_context>

<pallas_src>
import functools

import jax
import jax.numpy as jnp
from jax.experimental import pallas as pl
from jax.experimental.pallas import tpu as pltpu

LANES = 128          # width of the 128-lane hidden activations
K_IN_MIN = 16        # narrow x-slab width (one bf16 sublane tile)
OUT_LANES_MIN = 8    # narrow output-slab width


def _round_up(n, m):
    return ((n + m - 1) // m) * m


def _cdiv(a, b):
    return -(-a // b)


# ----------------------------------------------------------------------------
# Kernel: whole genNet forward on one batch tile, all weights VMEM-resident.
# ----------------------------------------------------------------------------
def gennet_kernel(x_ref, w_nar_ref, w_big_ref, w_out_ref, weq_ref, o_ref, *, equiv):
    """x_ref   : (bb, K_IN)        bf16  x at lanes [0,D), 1.0 at lane K_IN-1
       w_nar   : (1, K_IN, 128)    bf16  fused head block (equiv) or first Linear
       w_big   : (n, 128, 128)     bf16  hidden Linears (bias in row 127, ones at [127,127])
       w_out   : (128, OUT_LANES)  bf16  output Linear (bias in row 127)
       weq     : (1, 128)          f32   w_eq at lanes [D, 2D) (equiv only)
       o_ref   : (bb, OUT_LANES)   f32
    """
    x = x_ref[...]                                                    # (bb, K_IN) bf16
    # Fused first matmul.  equiv: cols [0,D)=x@bi, [D,2D)=x@w_skip + b_eq(+b_skip)
    # (bias injected via the ones row), col 127 = 1.0 (ones-lane propagation).
    nar = jnp.dot(x, w_nar_ref[0], preferred_element_type=jnp.float32)  # (bb,128) f32

    if equiv:
        k_in = x.shape[-1]
        # q = x . bi . x : only cols [0,D) of `nar` carry bi inside the reduce
        # window; the skip/bias cols meet zero lanes of x and the ones col (127)
        # lies outside the K_IN-lane window.
        q = jnp.sum(nar[:, :k_in] * x.astype(jnp.float32), axis=-1, keepdims=True)
        # y = q*w_eq + (x@w_skip + b_eq + b_skip).  Junk at lanes [0,D) is killed
        # by zero rows of the first big block; lane 127 stays exactly 1.0.
        h = q * weq_ref[...] + nar
    else:
        h = jnp.maximum(nar, 0.0)          # first Linear+ReLU (bias already folded)

    # Hidden Linears: bf16 MXU dots with f32 accumulation; bias via the ones lane,
    # so the only VPU work per layer is the ReLU (kept in f32 for v5e).
    for idx in range(w_big_ref.shape[0]):
        h = jnp.dot(h.astype(jnp.bfloat16), w_big_ref[idx],
                    preferred_element_type=jnp.float32)
        h = jnp.maximum(h, 0.0)

    # Output Linear, lane-narrow so the HBM writeback slab stays small.
    o_ref[...] = jnp.dot(h.astype(jnp.bfloat16), w_out_ref[...],
                         preferred_element_type=jnp.float32)


# ----------------------------------------------------------------------------
# Host-side packing of genNet parameters into bf16 MXU slabs (bias via ones lane).
# ----------------------------------------------------------------------------
def pack_gennet_params(p, *, equiv, skip, k_in, out_lanes, lanes=LANES):
    D, H = p["w0"].shape
    O = p["w_out"].shape[1]
    ones_in = k_in - 1         # ones lane in the narrow x slab
    ones_y = lanes - 1         # ones lane in the 128-wide activations

    assert 2 * D < k_in, "bi / skip columns must sit below the ones lane (q reduce)"
    assert H + 1 <= lanes and 2 * D + 1 <= lanes
    assert O <= out_lanes

    f32 = jnp.float32
    y_off = D if equiv else 0   # lane offset of the true y inside the 128-wide block

    def as_row(v):
        return jnp.asarray(v, f32).reshape(-1)

    # --- narrow (k_in, 128) block: fused head, or first Linear when equiv is off ---
    nar = jnp.zeros((k_in, lanes), f32)
    if equiv:
        nar = nar.at[:D, :D].set(jnp.asarray(p["bi"], f32))
        b_head = as_row(p["b_eq"])
        if skip:
            nar = nar.at[:D, y_off:y_off + D].set(jnp.asarray(p["w_skip"], f32))
            b_head = b_head + as_row(p["b_skip"])
        nar = nar.at[ones_in, y_off:y_off + D].set(b_head)
    else:
        nar = nar.at[:D, :H].set(jnp.asarray(p["w0"], f32))
        nar = nar.at[ones_in, :H].set(as_row(p["b0"]))
    nar = nar.at[ones_in, ones_y].set(1.0)

    # --- big (128, 128) blocks: hidden Linears, bias in the ones row ---
    def big_block(w, b, row_off):
        w = jnp.asarray(w, f32)
        blk = jnp.zeros((lanes, lanes), f32)
        blk = blk.at[row_off:row_off + w.shape[0], :w.shape[1]].set(w)
        blk = blk.at[ones_y, :w.shape[1]].set(as_row(b))
        blk = blk.at[ones_y, ones_y].set(1.0)
        return blk

    big = []
    if equiv:
        big.append(big_block(p["w0"], p["b0"], y_off))
    big.append(big_block(p["w1"], p["b1"], 0))
    big.append(big_block(p["w2"], p["b2"], 0))
    big.append(big_block(p["w3"], p["b3"], 0))

    # --- narrow output block (128, out_lanes) ---
    wout = jnp.zeros((lanes, out_lanes), f32)
    wout = wout.at[:H, :O].set(jnp.asarray(p["w_out"], f32))
    wout = wout.at[ones_y, :O].set(as_row(p["b_out"]))

    # --- w_eq row: the only piece that multiplies q, so it can't be MXU-folded ---
    weq = jnp.zeros((1, lanes), f32)
    if equiv:
        weq = weq.at[0, y_off:y_off + D].set(as_row(p["w_eq"]))

    bf16 = jnp.bfloat16
    return (nar[None].astype(bf16), jnp.stack(big).astype(bf16),
            wout.astype(bf16), weq)


# ----------------------------------------------------------------------------
# Batch tiling: multiples of 16, >= 2 balanced (even) steps when possible.
# ----------------------------------------------------------------------------
def _choose_batch_tiling(B, block_rows):
    B16 = _round_up(max(B, 1), 16)
    n_steps = max(_cdiv(B16, block_rows), 1)
    if B16 >= 32:
        n_steps = max(n_steps, 2)            # let v7x shard the grid over both TCs
    if n_steps > 1 and n_steps % 2 == 1:
        n_steps += 1                         # even split across the 2 TensorCores
    bb = _round_up(_cdiv(B16, n_steps), 16)
    return bb, bb * n_steps, n_steps


# ----------------------------------------------------------------------------
# Wrapper
# ----------------------------------------------------------------------------
def gen_net_forward(x, params, *, equiv=True, skip=True, block_rows=4096):
    x = jnp.asarray(x, jnp.float32)
    B, D = x.shape
    H = params["w0"].shape[1]
    O = params["w_out"].shape[1]

    k_in = max(K_IN_MIN, _round_up(2 * D + 1, 16))
    out_lanes = max(OUT_LANES_MIN, _round_up(O, 8))

    w_nar, w_big, w_out, weq = pack_gennet_params(
        params, equiv=equiv, skip=skip, k_in=k_in, out_lanes=out_lanes)

    bb, Bp, n_steps = _choose_batch_tiling(B, block_rows)

    # Narrow bf16 x slab: x at lanes [0,D), 1.0 at the ones lane, zeros elsewhere.
    x_pad = jnp.zeros((Bp, k_in), jnp.bfloat16)
    x_pad = x_pad.at[:B, :D].set(x.astype(jnp.bfloat16))
    x_pad = x_pad.at[:, k_in - 1].set(1.0)

    n_big = w_big.shape[0]
    kernel = functools.partial(gennet_kernel, equiv=equiv)

    flops = 2 * B * (D * H + 3 * H * H + H * O)
    if equiv:
        flops += 2 * B * (D * D + 2 * D)
        if skip:
            flops += 2 * B * D * D
    bytes_accessed = (2 * x_pad.size + 2 * w_nar.size + 2 * w_big.size
                      + 2 * w_out.size + 4 * weq.size + 4 * Bp * out_lanes)

    out_pad = pl.pallas_call(
        kernel,
        out_shape=jax.ShapeDtypeStruct((Bp, out_lanes), jnp.float32),
        grid=(n_steps,),
        in_specs=[
            pl.BlockSpec((bb, k_in), lambda i: (i, 0)),                 # x stream
            pl.BlockSpec((1, k_in, LANES), lambda i: (0, 0, 0)),        # head / first Linear
            pl.BlockSpec((n_big, LANES, LANES), lambda i: (0, 0, 0)),   # hidden Linears
            pl.BlockSpec((LANES, out_lanes), lambda i: (0, 0)),         # output Linear
            pl.BlockSpec((1, LANES), lambda i: (0, 0)),                 # w_eq row
        ],
        out_specs=pl.BlockSpec((bb, out_lanes), lambda i: (i, 0)),
        compiler_params=pltpu.CompilerParams(
            dimension_semantics=("parallel",),
            vmem_limit_bytes=32 * 1024 * 1024,   # headroom for big tiles, safe on v7x
        ),
        cost_estimate=pl.CostEstimate(flops=int(flops), transcendentals=0,
                                      bytes_accessed=int(bytes_accessed)),
    )(x_pad, w_nar, w_big, w_out, weq)

    return out_pad[:B, :O]


# ----------------------------------------------------------------------------
# Deterministic parameter construction (synthetic init, matches genNet shapes)
# ----------------------------------------------------------------------------
def make_params(key, input_size, hidden_size, output_size):
    ks = jax.random.split(key, 16)
    scale = 0.1

    def lin(kw, kb, fan_in, fan_out):
        w = scale * jax.random.normal(kw, (fan_in, fan_out), jnp.float32)
        b = scale * jax.random.normal(kb, (1, fan_out), jnp.float32)
        return w, b

    bi = jax.random.normal(ks[0], (input_size, input_size), jnp.float32)
    bi = 0.5 * (bi + bi.T)                                   # init='rand', symmetrized

    w_eq, b_eq = lin(ks[1], ks[2], 1, input_size)            # equiv_layer: Linear(1, D)
    w_eq = w_eq.reshape(1, input_size)
    w_skip, b_skip = lin(ks[3], ks[4], input_size, input_size)

    w0, b0 = lin(ks[5], ks[6], input_size, hidden_size)
    w1, b1 = lin(ks[7], ks[8], hidden_size, hidden_size)
    w2, b2 = lin(ks[9], ks[10], hidden_size, hidden_size)
    w3, b3 = lin(ks[11], ks[12], hidden_size, hidden_size)
    w_out, b_out = lin(ks[13], ks[14], hidden_size, output_size)

    return dict(bi=bi, w_eq=w_eq, b_eq=b_eq, w_skip=w_skip, b_skip=b_skip,
                w0=w0, b0=b0, w1=w1, b1=b1, w2=w2, b2=b2, w3=w3, b3=b3,
                w_out=w_out, b_out=b_out)


def gen_net_reference(x, p, *, equiv=True, skip=True):
    """Pure-JAX f32 reference of genNet.forward for the correctness check."""
    if equiv:
        q = jnp.einsum("bi,ij,bj->b", x, p["bi"], x)[:, None]   # (B, 1)
        y = q * p["w_eq"] + p["b_eq"]
        if skip:
            y = y + x @ p["w_skip"] + p["b_skip"]
    else:
        y = x
    h = jnp.maximum(y @ p["w0"] + p["b0"], 0.0)
    h = jnp.maximum(h @ p["w1"] + p["b1"], 0.0)
    h = jnp.maximum(h @ p["w2"] + p["b2"], 0.0)
    h = jnp.maximum(h @ p["w3"] + p["b3"], 0.0)
    return h @ p["w_out"] + p["b_out"]


if __name__ == "__main__":
    input_size, hidden_size, output_size = 4, 32, 1
    batch = 8

    key = jax.random.PRNGKey(0)
    kx, kp = jax.random.split(key)
    x = jax.random.normal(kx, (batch, input_size), jnp.float32)
    params = make_params(kp, input_size, hidden_size, output_size)

    out = gen_net_forward(x, params, equiv=True, skip=True)
    out = jax.block_until_ready(out)

    ref = gen_net_reference(x, params, equiv=True, skip=True)
    assert out.shape == (batch, output_size)
    # bf16 matmul inputs (f32 accumulation) -> loosened tolerance vs the f32 reference.
    assert jnp.allclose(out, ref, atol=2e-2, rtol=2e-2), "mismatch vs reference"

    print("KERNEL_OK")
</pallas_src>

<mosaic_0001>
module attributes {stable_mosaic.version = 11 : i64} {
  func.func @gennet_kernel(%arg0: i32, %arg1: memref<16x16xbf16, #tpu.memory_space<vmem>>, %arg2: memref<1x16x128xbf16, #tpu.memory_space<vmem>>, %arg3: memref<4x128x128xbf16, #tpu.memory_space<vmem>>, %arg4: memref<128x8xbf16, #tpu.memory_space<vmem>>, %arg5: memref<1x128xf32, #tpu.memory_space<vmem>>, %arg6: memref<16x8xf32, #tpu.memory_space<vmem>>) attributes {dimension_semantics = [#tpu.dimension_semantics<parallel>], iteration_bounds = array<i64: 1>, scalar_prefetch = 0 : i64, scratch_operands = 0 : i64, tpu.core_type = #tpu.core_type<tc>, window_params = [{transform_indices = @transform_0, window_bounds = array<i64: 16, 16>}, {pipeline_mode = #tpu.pipeline_mode<synchronous>, transform_indices = @transform_1, window_bounds = array<i64: 1, 16, 128>}, {pipeline_mode = #tpu.pipeline_mode<synchronous>, transform_indices = @transform_2, window_bounds = array<i64: 4, 128, 128>}, {pipeline_mode = #tpu.pipeline_mode<synchronous>, transform_indices = @transform_3, window_bounds = array<i64: 128, 8>}, {pipeline_mode = #tpu.pipeline_mode<synchronous>, transform_indices = @transform_4, window_bounds = array<i64: 1, 128>}, {transform_indices = @transform_5, window_bounds = array<i64: 16, 8>}]} {
    %c0 = arith.constant 0 : index
    %c0_0 = arith.constant 0 : index
    %0 = vector.load %arg1[%c0, %c0_0] : memref<16x16xbf16, #tpu.memory_space<vmem>>, vector<16x16xbf16>
    %c0_1 = arith.constant 0 : index
    %c0_2 = arith.constant 0 : index
    %c0_3 = arith.constant 0 : index
    %1 = vector.load %arg2[%c0_1, %c0_2, %c0_3] : memref<1x16x128xbf16, #tpu.memory_space<vmem>>, vector<1x16x128xbf16>
    %2 = vector.shape_cast %1 : vector<1x16x128xbf16> to vector<16x128xbf16>
    %cst = arith.constant dense<0.000000e+00> : vector<16x128xf32>
    %3 = tpu.matmul %0, %2, %cst {dimension_numbers = #tpu.dot_dimension_numbers<[1], [0], [0], [1], [0, 0, 1, 1], [], []>} : vector<16x16xbf16>, vector<16x128xbf16>, vector<16x128xf32> -> vector<16x128xf32>
    %4 = vector.extract_strided_slice %3 {offsets = [0, 0], sizes = [16, 16], strides = [1, 1]} : vector<16x128xf32> to vector<16x16xf32>
    %5 = arith.extf %0 : vector<16x16xbf16> to vector<16x16xf32>
    %6 = arith.mulf %4, %5 : vector<16x16xf32>
    %cst_4 = arith.constant dense<0.000000e+00> : vector<16xf32>
    %7 = vector.multi_reduction <add>, %6, %cst_4 [1] : vector<16x16xf32> to vector<16xf32>
    %8 = vector.shape_cast %7 : vector<16xf32> to vector<16x1xf32>
    %c0_5 = arith.constant 0 : index
    %c0_6 = arith.constant 0 : index
    %9 = vector.load %arg5[%c0_5, %c0_6] : memref<1x128xf32, #tpu.memory_space<vmem>>, vector<1x128xf32>
    %10 = vector.broadcast %8 : vector<16x1xf32> to vector<16x128xf32>
    %11 = vector.broadcast %9 : vector<1x128xf32> to vector<16x128xf32>
    %12 = arith.mulf %10, %11 : vector<16x128xf32>
    %13 = arith.addf %12, %3 : vector<16x128xf32>
    %14 = arith.truncf %13 : vector<16x128xf32> to vector<16x128xbf16>
    %c0_7 = arith.constant 0 : index
    %c0_8 = arith.constant 0 : index
    %c0_9 = arith.constant 0 : index
    %15 = vector.load %arg3[%c0_7, %c0_8, %c0_9] : memref<4x128x128xbf16, #tpu.memory_space<vmem>>, vector<1x128x128xbf16>
    %16 = vector.shape_cast %15 : vector<1x128x128xbf16> to vector<128x128xbf16>
    %cst_10 = arith.constant dense<0.000000e+00> : vector<16x128xf32>
    %17 = tpu.matmul %14, %16, %cst_10 {dimension_numbers = #tpu.dot_dimension_numbers<[1], [0], [0], [1], [0, 0, 1, 1], [], []>} : vector<16x128xbf16>, vector<128x128xbf16>, vector<16x128xf32> -> vector<16x128xf32>
    %cst_11 = arith.constant 0.000000e+00 : f32
    %18 = vector.broadcast %cst_11 : f32 to vector<16x128xf32>
    %19 = arith.maximumf %17, %18 : vector<16x128xf32>
    %20 = arith.truncf %19 : vector<16x128xf32> to vector<16x128xbf16>
    %c1 = arith.constant 1 : index
    %c0_12 = arith.constant 0 : index
    %c0_13 = arith.constant 0 : index
    %21 = vector.load %arg3[%c1, %c0_12, %c0_13] : memref<4x128x128xbf16, #tpu.memory_space<vmem>>, vector<1x128x128xbf16>
    %22 = vector.shape_cast %21 : vector<1x128x128xbf16> to vector<128x128xbf16>
    %cst_14 = arith.constant dense<0.000000e+00> : vector<16x128xf32>
    %23 = tpu.matmul %20, %22, %cst_14 {dimension_numbers = #tpu.dot_dimension_numbers<[1], [0], [0], [1], [0, 0, 1, 1], [], []>} : vector<16x128xbf16>, vector<128x128xbf16>, vector<16x128xf32> -> vector<16x128xf32>
    %cst_15 = arith.constant 0.000000e+00 : f32
    %24 = vector.broadcast %cst_15 : f32 to vector<16x128xf32>
    %25 = arith.maximumf %23, %24 : vector<16x128xf32>
    %26 = arith.truncf %25 : vector<16x128xf32> to vector<16x128xbf16>
    %c2 = arith.constant 2 : index
    %c0_16 = arith.constant 0 : index
    %c0_17 = arith.constant 0 : index
    %27 = vector.load %arg3[%c2, %c0_16, %c0_17] : memref<4x128x128xbf16, #tpu.memory_space<vmem>>, vector<1x128x128xbf16>
    %28 = vector.shape_cast %27 : vector<1x128x128xbf16> to vector<128x128xbf16>
    %cst_18 = arith.constant dense<0.000000e+00> : vector<16x128xf32>
    %29 = tpu.matmul %26, %28, %cst_18 {dimension_numbers = #tpu.dot_dimension_numbers<[1], [0], [0], [1], [0, 0, 1, 1], [], []>} : vector<16x128xbf16>, vector<128x128xbf16>, vector<16x128xf32> -> vector<16x128xf32>
    %cst_19 = arith.constant 0.000000e+00 : f32
    %30 = vector.broadcast %cst_19 : f32 to vector<16x128xf32>
    %31 = arith.maximumf %29, %30 : vector<16x128xf32>
    %32 = arith.truncf %31 : vector<16x128xf32> to vector<16x128xbf16>
    %c3 = arith.constant 3 : index
    %c0_20 = arith.constant 0 : index
    %c0_21 = arith.constant 0 : index
    %33 = vector.load %arg3[%c3, %c0_20, %c0_21] : memref<4x128x128xbf16, #tpu.memory_space<vmem>>, vector<1x128x128xbf16>
    %34 = vector.shape_cast %33 : vector<1x128x128xbf16> to vector<128x128xbf16>
    %cst_22 = arith.constant dense<0.000000e+00> : vector<16x128xf32>
    %35 = tpu.matmul %32, %34, %cst_22 {dimension_numbers = #tpu.dot_dimension_numbers<[1], [0], [0], [1], [0, 0, 1, 1], [], []>} : vector<16x128xbf16>, vector<128x128xbf16>, vector<16x128xf32> -> vector<16x128xf32>
    %cst_23 = arith.constant 0.000000e+00 : f32
    %36 = vector.broadcast %cst_23 : f32 to vector<16x128xf32>
    %37 = arith.maximumf %35, %36 : vector<16x128xf32>
    %38 = arith.truncf %37 : vector<16x128xf32> to vector<16x128xbf16>
    %c0_24 = arith.constant 0 : index
    %c0_25 = arith.constant 0 : index
    %39 = vector.load %arg4[%c0_24, %c0_25] : memref<128x8xbf16, #tpu.memory_space<vmem>>, vector<128x8xbf16>
    %cst_26 = arith.constant dense<0.000000e+00> : vector<16x8xf32>
    %40 = tpu.matmul %38, %39, %cst_26 {dimension_numbers = #tpu.dot_dimension_numbers<[1], [0], [0], [1], [0, 0, 1, 1], [], []>} : vector<16x128xbf16>, vector<128x8xbf16>, vector<16x8xf32> -> vector<16x8xf32>
    %c0_27 = arith.constant 0 : index
    %c0_28 = arith.constant 0 : index
    %41 = vector.load %arg6[%c0_27, %c0_28] : memref<16x8xf32, #tpu.memory_space<vmem>>, vector<16x8xf32>
    tpu.vector_store %arg6[%c0_27, %c0_28], %40 {strides = array<i32>} : memref<16x8xf32, #tpu.memory_space<vmem>>, vector<16x8xf32>,
    return
  }
  func.func @transform_0(%arg0: i32) -> (i32, i32) {
    %c0_i32 = arith.constant 0 : i32
    %c0_i32_0 = arith.constant 0 : i32
    return %arg0, %c0_i32 : i32, i32
  }
  func.func @transform_1(%arg0: i32) -> (i32, i32, i32) {
    %c0_i32 = arith.constant 0 : i32
    %c0_i32_0 = arith.constant 0 : i32
    %c0_i32_1 = arith.constant 0 : i32
    %c0_i32_2 = arith.constant 0 : i32
    return %c0_i32, %c0_i32_0, %c0_i32_1 : i32, i32, i32
  }
  func.func @transform_2(%arg0: i32) -> (i32, i32, i32) {
    %c0_i32 = arith.constant 0 : i32
    %c0_i32_0 = arith.constant 0 : i32
    %c0_i32_1 = arith.constant 0 : i32
    %c0_i32_2 = arith.constant 0 : i32
    return %c0_i32, %c0_i32_0, %c0_i32_1 : i32, i32, i32
  }
  func.func @transform_3(%arg0: i32) -> (i32, i32) {
    %c0_i32 = arith.constant 0 : i32
    %c0_i32_0 = arith.constant 0 : i32
    %c0_i32_1 = arith.constant 0 : i32
    return %c0_i32, %c0_i32_0 : i32, i32
  }
  func.func @transform_4(%arg0: i32) -> (i32, i32) {
    %c0_i32 = arith.constant 0 : i32
    %c0_i32_0 = arith.constant 0 : i32
    %c0_i32_1 = arith.constant 0 : i32
    return %c0_i32, %c0_i32_0 : i32, i32
  }
  func.func @transform_5(%arg0: i32) -> (i32, i32) {
    %c0_i32 = arith.constant 0 : i32
    %c0_i32_0 = arith.constant 0 : i32
    return %arg0, %c0_i32 : i32, i32
  }
}

</mosaic_0001>

<bundles_post_ra>
// kernel: tpu_custom_call.1
= control target key start
LH: loop header
LB: loop body
LE: loop exit
PB: predicated region body
PF: predicated region fallthrough
CT: control target
= control target key end

     0   :  { %10 = vsyncpa [#allocation3], 0  ;;  %s932_s18 = smov [#allocation2]   ;;  %s1065_s0 = inlined_call_operand.vmem [shape: bf16[16,16], index: 0, kind: input, shape index: {}]   ;;  %s1066_s1 = inlined_call_operand.vmem [shape: bf16[1,16,128], index: 1, kind: input, shape index: {}]   ;;  %s1067_s2 = inlined_call_operand.hbm [shape: bf16[4,128,128], index: 2, kind: input, shape index: {}]   ;;  %s1068_s3 = inlined_call_operand.vmem [shape: bf16[128,8], index: 3, kind: input, shape index: {}]   ;;  %s1069_s4 = inlined_call_operand.vmem [shape: f32[1,128], index: 4, kind: input, shape index: {}]   ;;  %s1070_s5 = inlined_call_operand.vmem [shape: f32[16,8], index: 5, kind: output, shape index: {}]  }
   0x1   :  { %s20_s19 = sshll.u32 %s932_s18, 4  ;;  %s21_s19 = int_to_ptr.vmem [resolvable:$true] %s20_s19 }
   0x2   :  { %s918_s20 = scalar_lea.vmem %s21_s19, 4096  ;;  %p923_p1 = scmp.lt.s32.totalorder %s21_s19, %s21_s19 }
   0x3   :  { %p919_p0 = scmp.ne.s32.totalorder %s21_s19, %s918_s20  ;;  %p924_p2 = scmp.lt.s32.totalorder %s918_s20, %s918_s20 }
   0x5   :  { %p925_p3 = por %p924_p2, %p923_p1 }
   0x7   :  { %p926_p4 = pnand %p925_p3, %p919_p0 }
   0x9   :  { %929 = shalt.err (!%p926_p4)
}
   0xa   :  { %s933_s21 = smov 64   ;;  %s934_s22 = smov 4  }
   0xb   :  { %26 = dma.hbm_to_vmem [thread:$0]  %s1067_s2, 4096, %s21_s19, [#allocation3], %s933_s21, %s933_s21, %s934_s22  }
   0xc   :  { %930 = dma.done.wait [#allocation3], 4096  }
   0xd   :  { %931 = vsyncadd [#allocation3], 4294963200  ;;  %v935_v0 = vmov 0.0   ;;  %vm936_vm0 = vmmov 0   ;;  %v867_v1 = vld [vmem:[%s1066_s1] sm:$0xff]   ;;  %vm50_vm1 = vcmask 130048  }
   0xe   :  { %756 = vmatprep.subr.bf16.mxu0 %v935_v0  ;;  %758 = vmatprep.mubr.msk.bf16.mxu0 %vm936_vm0, %v935_v0  ;;  %v35_v2 = vld [vmem:[%s1065_s0] sm:$0xff]   ;;  %v869_v3 = vld [vmem:[#allocation2 + $0x38] sm:$0xff]   ;;  %v870_v4 = vld [vmem:[#allocation2 + $0x30] sm:$0xff]   ;;  %vm657_vm2 = vcmask 64512  }
   0xf   :  { %762 = vmatprep.subr.bf16.mxu1 %v935_v0  ;;  %778 = vmatprep.mubr.msk.bf16.mxu1 %vm936_vm0, %v935_v0  ;;  %v871_v5 = vld [vmem:[#allocation2 + $0x28] sm:$0xff]   ;;  %v872_v6 = vld [vmem:[#allocation2 + $0x20] sm:$0xff]   ;;  %v873_v7 = vld [vmem:[#allocation2 + $0x18] sm:$0xff]   ;;  %v95_v9 = vunpack.c.l.bf16 %v35_v2  ;;  %v96_v12 = vunpack.c.h.bf16 %v35_v2 }
  0x10   :  { %757 = vmatpush3.bf16.msra.mxu0 %v867_v1  ;;  %763 = vmatpush3.bf16.msra.mxu1 %v869_v3  ;;  %v874_v8 = vld [vmem:[#allocation2 + $0x10] sm:$0xff]   ;;  %v875_v19 = vld [vmem:[#allocation2 + $0x8] sm:$0xff]   ;;  %v876_v20 = vld [vmem:[#allocation2] sm:$0xff]  }
  0x11   :  { %782 = vmatprep.subr.bf16.mxu0 %v935_v0  ;;  %764 = vmatprep.subr.bf16.mxu1 %v935_v0  ;;  %v877_v21 = vld [vmem:[#allocation2 + $0x78] sm:$0xff]   ;;  %v878_v22 = vld [vmem:[#allocation2 + $0x70] sm:$0xff]   ;;  %v879_v23 = vld [vmem:[#allocation2 + $0x68] sm:$0xff]  }
  0x12   :  { %v880_v24 = vld [vmem:[#allocation2 + $0x60] sm:$0xff]   ;;  %v881_v25 = vld [vmem:[#allocation2 + $0x58] sm:$0xff]   ;;  %v882_v26 = vld [vmem:[#allocation2 + $0x50] sm:$0xff]  }
  0x13   :  { %759 = vmatmul.mubr.msk.bf16.vlgmr.msra.gmra.mxu0 %vm50_vm1, %v35_v2  ;;  %v668_v27 = vld [vmem:[%s1069_s4] ss:$0 sm:$0xff]  ;;  %v883_v35 = vld [vmem:[#allocation2 + $0x48] sm:$0xff]   ;;  %v885_v37 = vld [vmem:[#allocation2 + $0xb8] sm:$0xff]  }
  0x14   :  { %798 = vmatprep.mubr.msk.bf16.mxu0 %vm936_vm0, %v935_v0  ;;  %765 = vmatpush3.bf16.msra.mxu1 %v870_v4  ;;  %v884_v36 = vld [vmem:[#allocation2 + $0x40] sm:$0xff]   ;;  %v886_v38 = vld [vmem:[#allocation2 + $0xb0] sm:$0xff]   ;;  %v887_v39 = vld [vmem:[#allocation2 + $0xa8] sm:$0xff]  }
  0x15   :  { %766 = vmatprep.subr.bf16.mxu1 %v935_v0  ;;  %783 = vmatpush3.bf16.msra.mxu0 %v877_v21  ;;  %v888_v40 = vld [vmem:[#allocation2 + $0xa0] sm:$0xff]   ;;  %v889_v41 = vld [vmem:[#allocation2 + $0x98] sm:$0xff]   ;;  %v890_v42 = vld [vmem:[#allocation2 + $0x90] sm:$0xff]  }
  0x16   :  { %784 = vmatprep.subr.bf16.mxu0 %v935_v0  ;;  %v891_v50 = vld [vmem:[#allocation2 + $0x88] sm:$0xff]   ;;  %v892_v51 = vld [vmem:[#allocation2 + $0x80] sm:$0xff]   ;;  %v893_v52 = vld [vmem:[#allocation2 + $0xf8] sm:$0xff]  }
  0x17   :  { %v894_v53 = vld [vmem:[#allocation2 + $0xf0] sm:$0xff]   ;;  %v895_v54 = vld [vmem:[#allocation2 + $0xe8] sm:$0xff]   ;;  %v896_v55 = vld [vmem:[#allocation2 + $0xe0] sm:$0xff]  }
  0x18   :  { %767 = vmatpush3.bf16.msra.mxu1 %v871_v5  ;;  %v897_v56 = vld [vmem:[#allocation2 + $0xd8] sm:$0xff]   ;;  %v898_v57 = vld [vmem:[#allocation2 + $0xd0] sm:$0xff]   ;;  %v899_v2 = vld [vmem:[#allocation2 + $0xc8] sm:$0xff]  }
  0x19   :  { %768 = vmatprep.subr.bf16.mxu1 %v935_v0  ;;  %785 = vmatpush3.bf16.msra.mxu0 %v878_v22  ;;  %v900_v3 = vld [vmem:[#allocation2 + $0xc0] sm:$0xff]   ;;  %v901_v4 = vld [vmem:[%s1068_s3 + $0x38] sm:$0xff]   ;;  %v902_v5 = vld [vmem:[%s1068_s3 + $0x30] sm:$0xff]  }
  0x1a   :  { %786 = vmatprep.subr.bf16.mxu0 %v935_v0 }
  0x1c   :  { %769 = vmatpush3.bf16.msra.mxu1 %v872_v6  ;;  %v903_v6 = vld [vmem:[%s1068_s3 + $0x28] sm:$0xff]  }
  0x1d   :  { %770 = vmatprep.subr.bf16.mxu1 %v935_v0  ;;  %787 = vmatpush3.bf16.msra.mxu0 %v879_v23 }
  0x1e   :  { %788 = vmatprep.subr.bf16.mxu0 %v935_v0 }
  0x20   :  { %771 = vmatpush3.bf16.msra.mxu1 %v873_v7  ;;  %v904_v7 = vld [vmem:[%s1068_s3 + $0x20] sm:$0xff]  }
  0x21   :  { %772 = vmatprep.subr.bf16.mxu1 %v935_v0  ;;  %789 = vmatpush3.bf16.msra.mxu0 %v880_v24 }
  0x22   :  { %790 = vmatprep.subr.bf16.mxu0 %v935_v0 }
  0x24   :  { %773 = vmatpush3.bf16.msra.mxu1 %v874_v8  ;;  %v905_v8 = vld [vmem:[%s1068_s3 + $0x18] sm:$0xff]  }
  0x25   :  { %774 = vmatprep.subr.bf16.mxu1 %v935_v0  ;;  %791 = vmatpush3.bf16.msra.mxu0 %v881_v25 }
  0x26   :  { %792 = vmatprep.subr.bf16.mxu0 %v935_v0 }
  0x28   :  { %775 = vmatpush3.bf16.msra.mxu1 %v875_v19 }
  0x29   :  { %776 = vmatprep.subr.bf16.mxu1 %v935_v0  ;;  %793 = vmatpush3.bf16.msra.mxu0 %v882_v26 }
  0x2a   :  { %794 = vmatprep.subr.bf16.mxu0 %v935_v0 }
  0x2c   :  { %777 = vmatpush3.bf16.msra.mxu1 %v876_v20 }
  0x2d   :  { %802 = vmatprep.subr.bf16.mxu1 %v935_v0  ;;  %795 = vmatpush3.bf16.msra.mxu0 %v883_v35 }
  0x2e   :  { %796 = vmatprep.subr.bf16.mxu0 %v935_v0 }
  0x31   :  { %797 = vmatpush3.bf16.msra.mxu0 %v884_v36 }
  0x32   :  { %822 = vmatprep.subr.bf16.mxu0 %v935_v0 }
  0xd3   :  { %v88_v10 = vpop.f32.mrf.mxu0 }
  0xd4   :  { %v97_v11 = vmul.f32 %v95_v9, %v88_v10  ;;  %v906_v9 = vld [vmem:[%s1068_s3 + $0x10] sm:$0xff]  }
  0xd5   :  { %v760_v13 = vpop.f32.mrf.mxu0 }
  0xd6   :  { %v99_v14 = vsel %vm50_vm1, %v97_v11, 0.0 }
  0xd7   :  { %100 = vadd.xlane.f32.xlu0 %v99_v14  ;;  %v91_v15 = vpop.f32.mrf.mxu0 }
  0xd8   :  { %v98_v16 = vmul.f32 %v96_v12, %v91_v15 }
  0xd9   :  { %v761_v17 = vpop.f32.mrf.mxu0 }
  0xda   :  { %v102_v18 = vsel %vm50_vm1, %v98_v16, 0.0  ;;  %v907_v17 = vld [vmem:[%s1068_s3 + $0x8] sm:$0xff]  }
  0xdb   :  { %103 = vadd.xlane.f32.xlu0 %v102_v18  ;;  %v908_v18 = vld [vmem:[%s1068_s3] sm:$0xff]  }
 0x160   :  { %v101_v28 = vpop.xlane.xlu0 %100 }
 0x161   :  { %v112_v29 = vmul.f32 %v668_v27, %v101_v28 }
 0x163   :  { %v114_v32 = vadd.f32 %v112_v29, %v88_v10 }
 0x164   :  { %v104_v30 = vpop.xlane.xlu0 %103 }
 0x165   :  { %v113_v31 = vmul.f32 %v668_v27, %v104_v30 }
 0x167   :  { %v115_v33 = vadd.f32 %v113_v31, %v91_v15 }
 0x169   :  { %v116_v34 = vpack.c.bf16 %v115_v33, %v114_v32 }
 0x16b   :  { %779 = vmatmul.mubr.bf16.vlgmr.msra.gmra.mxu1 %v116_v34 }
 0x16c   :  { %818 = vmatprep.mubr.msk.bf16.mxu1 %vm936_vm0, %v935_v0  ;;  %803 = vmatpush3.bf16.msra.mxu1 %v885_v37 }
 0x16d   :  { %804 = vmatprep.subr.bf16.mxu1 %v935_v0 }
 0x170   :  { %805 = vmatpush3.bf16.msra.mxu1 %v886_v38 }
 0x171   :  { %806 = vmatprep.subr.bf16.mxu1 %v935_v0 }
 0x174   :  { %807 = vmatpush3.bf16.msra.mxu1 %v887_v39 }
 0x175   :  { %808 = vmatprep.subr.bf16.mxu1 %v935_v0 }
 0x178   :  { %809 = vmatpush3.bf16.msra.mxu1 %v888_v40 }
 0x179   :  { %810 = vmatprep.subr.bf16.mxu1 %v935_v0 }
 0x17c   :  { %811 = vmatpush3.bf16.msra.mxu1 %v889_v41 }
 0x17d   :  { %812 = vmatprep.subr.bf16.mxu1 %v935_v0 }
 0x180   :  { %813 = vmatpush3.bf16.msra.mxu1 %v890_v42 }
 0x181   :  { %814 = vmatprep.subr.bf16.mxu1 %v935_v0 }
 0x184   :  { %815 = vmatpush3.bf16.msra.mxu1 %v891_v50 }
 0x185   :  { %816 = vmatprep.subr.bf16.mxu1 %v935_v0 }
 0x188   :  { %817 = vmatpush3.bf16.msra.mxu1 %v892_v51 }
 0x189   :  { %842 = vmatprep.subr.bf16.mxu1 %v935_v0 }
 0x22b   :  { %v215_v43 = vpop.f32.mrf.mxu1 }
 0x22c   :  { %v222_v46 = vmax.f32 %v215_v43, 0.0 }
 0x22d   :  { %v780_v44 = vpop.f32.mrf.mxu1 }
 0x22f   :  { %v218_v45 = vpop.f32.mrf.mxu1 }
 0x230   :  { %v223_v47 = vmax.f32 %v218_v45, 0.0 }
 0x231   :  { %v781_v48 = vpop.f32.mrf.mxu1 }
 0x232   :  { %v224_v49 = vpack.c.bf16 %v223_v47, %v222_v46 }
 0x234   :  { %799 = vmatmul.mubr.bf16.vlgmr.msra.gmra.mxu0 %v224_v49 }
 0x235   :  { %838 = vmatprep.mubr.msk.bf16.mxu0 %vm936_vm0, %v935_v0  ;;  %823 = vmatpush3.bf16.msra.mxu0 %v893_v52 }
 0x236   :  { %824 = vmatprep.subr.bf16.mxu0 %v935_v0 }
 0x239   :  { %825 = vmatpush3.bf16.msra.mxu0 %v894_v53 }
 0x23a   :  { %826 = vmatprep.subr.bf16.mxu0 %v935_v0 }
 0x23d   :  { %827 = vmatpush3.bf16.msra.mxu0 %v895_v54 }
 0x23e   :  { %828 = vmatprep.subr.bf16.mxu0 %v935_v0 }
 0x241   :  { %829 = vmatpush3.bf16.msra.mxu0 %v896_v55 }
 0x242   :  { %830 = vmatprep.subr.bf16.mxu0 %v935_v0 }
 0x245   :  { %831 = vmatpush3.bf16.msra.mxu0 %v897_v56 }
 0x246   :  { %832 = vmatprep.subr.bf16.mxu0 %v935_v0 }
 0x249   :  { %833 = vmatpush3.bf16.msra.mxu0 %v898_v57 }
 0x24a   :  { %834 = vmatprep.subr.bf16.mxu0 %v935_v0 }
 0x24d   :  { %835 = vmatpush3.bf16.msra.mxu0 %v899_v2 }
 0x24e   :  { %836 = vmatprep.subr.bf16.mxu0 %v935_v0 }
 0x251   :  { %837 = vmatpush3.bf16.msra.mxu0 %v900_v3 }
 0x2f4   :  { %v324_v58 = vpop.f32.mrf.mxu0 }
 0x2f5   :  { %v331_v61 = vmax.f32 %v324_v58, 0.0 }
 0x2f6   :  { %v800_v59 = vpop.f32.mrf.mxu0 }
 0x2f8   :  { %v327_v60 = vpop.f32.mrf.mxu0 }
 0x2f9   :  { %v332_v62 = vmax.f32 %v327_v60, 0.0 }
 0x2fa   :  { %v801_v63 = vpop.f32.mrf.mxu0 }
 0x2fb   :  { %v333_v1 = vpack.c.bf16 %v332_v62, %v331_v61 }
 0x2fd   :  { %819 = vmatmul.mubr.bf16.vlgmr.msra.gmra.mxu1 %v333_v1 }
 0x2fe   :  { %858 = vmatprep.mubr.msk.bf16.mxu1 %vm936_vm0, %v935_v0  ;;  %843 = vmatpush3.bf16.msra.mxu1 %v901_v4 }
 0x2ff   :  { %844 = vmatprep.subr.bf16.mxu1 %v935_v0 }
 0x302   :  { %845 = vmatpush3.bf16.msra.mxu1 %v902_v5 }
 0x303   :  { %846 = vmatprep.subr.bf16.mxu1 %v935_v0 }
 0x306   :  { %847 = vmatpush3.bf16.msra.mxu1 %v903_v6 }
 0x307   :  { %848 = vmatprep.subr.bf16.mxu1 %v935_v0 }
 0x30a   :  { %849 = vmatpush3.bf16.msra.mxu1 %v904_v7 }
 0x30b   :  { %850 = vmatprep.subr.bf16.mxu1 %v935_v0 }
 0x30e   :  { %851 = vmatpush3.bf16.msra.mxu1 %v905_v8 }
 0x30f   :  { %852 = vmatprep.subr.bf16.mxu1 %v935_v0 }
 0x312   :  { %853 = vmatpush3.bf16.msra.mxu1 %v906_v9 }
 0x313   :  { %854 = vmatprep.subr.bf16.mxu1 %v935_v0 }
 0x316   :  { %855 = vmatpush3.bf16.msra.mxu1 %v907_v17 }
 0x317   :  { %856 = vmatprep.subr.bf16.mxu1 %v935_v0 }
 0x31a   :  { %857 = vmatpush3.bf16.msra.mxu1 %v908_v18 }
 0x3bd   :  { %v433_v10 = vpop.f32.mrf.mxu1 }
 0x3be   :  { %v440_v13 = vmax.f32 %v433_v10, 0.0 }
 0x3bf   :  { %v820_v11 = vpop.f32.mrf.mxu1 }
 0x3c1   :  { %v436_v12 = vpop.f32.mrf.mxu1 }
 0x3c2   :  { %v441_v14 = vmax.f32 %v436_v12, 0.0 }
 0x3c3   :  { %v821_v15 = vpop.f32.mrf.mxu1 }
 0x3c4   :  { %v442_v16 = vpack.c.bf16 %v441_v14, %v440_v13 }
 0x3c6   :  { %839 = vmatmul.mubr.bf16.vlgmr.msra.gmra.mxu0 %v442_v16 }
 0x486   :  { %v542_v19 = vpop.f32.mrf.mxu0 }
 0x487   :  { %v549_v22 = vmax.f32 %v542_v19, 0.0 }
 0x488   :  { %v840_v20 = vpop.f32.mrf.mxu0 }
 0x48a   :  { %v545_v21 = vpop.f32.mrf.mxu0 }
 0x48b   :  { %v550_v23 = vmax.f32 %v545_v21, 0.0 }
 0x48c   :  { %v841_v24 = vpop.f32.mrf.mxu0 }
 0x48d   :  { %v551_v25 = vpack.c.bf16 %v550_v23, %v549_v22 }
 0x48f   :  { %859 = vmatmul.mubr.bf16.vlgmr.msra.gmra.mxu1 %v551_v25 }
 0x54f   :  { %v650_v26 = vpop.f32.mrf.mxu1 }
 0x550   :  { %658 = vst.msk [vmem:[%s1070_s5] sm:$0xff] %vm657_vm2, %v650_v26 }
 0x551   :  { %v860_v0 = vpop.f32.mrf.mxu1 }
 0x553   :  { %v653_v27 = vpop.f32.mrf.mxu1 }
 0x554   :  { %659 = vst.msk [vmem:[%s1070_s5 + $0x8] sm:$0xff] %vm657_vm2, %v653_v27 }
 0x555   :  { %v861_v28 = vpop.f32.mrf.mxu1 }
 0x556   :  { %664 = vsyncpa [#allocation3], 1 }

</bundles_post_ra>
